<compile_context>
chip_gen: v7x
topology: tpu7x:2x2x1
jax: 0.10.0
libtpu: 0.0.40
codegen_flags: <defaults>
</compile_context>

<pallas_src>
import jax
import jax.numpy as jnp
from jax.experimental import pallas as pl
from jax.experimental.pallas import tpu as pltpu


def _round_up(n: int, m: int) -> int:
    return ((n + m - 1) // m) * m


def _tpu_vmem_bytes() -> int:
    """Physical VMEM of the current TPU generation (fallback: 64 MiB)."""
    try:
        return int(pltpu.get_tpu_info().vmem_capacity_bytes)
    except Exception:
        return 64 * 1024 * 1024  # conservative: v7x per-TC VMEM


def value_mlp_kernel(x_ref, w1_ref, b1_ref, w2_ref, b2_ref, w3_ref, b3_ref, o_ref):
    # Hoist single reads of biases / final weight row.
    b1 = b1_ref[...]          # (1, hidden)  f32
    b2 = b2_ref[...]          # (1, hidden)  f32
    b3 = b3_ref[...]          # (1, 1)       f32
    w3_row = w3_ref[...]      # (1, hidden)  lane-dense row of the final weights

    # In-kernel cast to the compute dtype (no extra HBM pass in the wrapper).
    x = x_ref[...].astype(w1_ref.dtype)      # (TB, state_dim)

    # Layer 1: Linear + ReLU  (MXU matmul, f32 accumulation).
    h1 = jnp.dot(x, w1_ref[...], preferred_element_type=jnp.float32)
    h1 = jnp.maximum(h1 + b1, 0.0)

    # Layer 2: Linear + ReLU.
    h2 = jnp.dot(h1.astype(w2_ref.dtype), w2_ref[...],
                 preferred_element_type=jnp.float32)
    h2 = jnp.maximum(h2 + b2, 0.0)

    # Layer 3: hidden -> 1.  N=1 MXU matmul would use 1/128..1/256 of the
    # output lanes; do it as a VPU multiply + XLU lane-reduction instead.
    out = jnp.sum(h2 * w3_row, axis=-1, keepdims=True) + b3
    o_ref[...] = out.astype(o_ref.dtype)


def value_forward(x, params, *, block_batch=None, compute_dtype=jnp.float32):
    """x: (B, state_dim) f32.  Returns (B, 1) f32, matching Value.forward.

    compute_dtype: jnp.bfloat16 narrows the matmul operands inside the kernel
    (f32 accumulation); the HBM read of x stays f32.
    """
    w1, b1, w2, b2, w3, b3 = params
    B, state_dim = x.shape
    hidden = w1.shape[1]

    sub = 16 if compute_dtype == jnp.bfloat16 else 8

    # Generation-aware tile cap: ~4 KiB VMEM per batch row (lane-padded
    # x / h1 / h2 / out, double-buffered); keep total under ~half of physical
    # VMEM.  v7x (64 MiB) -> 8192, v5e/v6e (128 MiB) -> 16384.
    vmem_cap = _tpu_vmem_bytes()
    tb_cap = max(sub, min(16384, ((vmem_cap // 2) // 4096) // sub * sub))

    if block_batch is None:
        block_batch = tb_cap
    TB = min(_round_up(block_batch, sub), _round_up(B, sub), tb_cap)
    num_blocks = pl.cdiv(B, TB)   # boundary block is write-masked by Pallas

    # Weights are tiny: cast once in the wrapper.  Final layer weights as a
    # lane-dense (1, hidden) row for the VPU path.
    w1c = w1.astype(compute_dtype)
    w2c = w2.astype(compute_dtype)
    w3_row = w3.reshape(1, hidden).astype(compute_dtype)

    const = lambda a: pl.BlockSpec(a.shape, lambda i: (0,) * a.ndim)

    # Explicit VMEM budget: estimated footprint (with headroom), capped below
    # the physical VMEM of this generation.
    est_vmem = TB * 4 * 1024 + (2 << 20)
    vmem_limit = int(min(max(est_vmem, 32 << 20), int(vmem_cap * 0.85)))

    flops = 2 * B * (state_dim * hidden + hidden * hidden + hidden)
    bytes_accessed = (x.size * x.dtype.itemsize + B * 4 +
                      sum(a.size * a.dtype.itemsize
                          for a in (w1c, b1, w2c, b2, w3_row, b3)))

    out = pl.pallas_call(
        value_mlp_kernel,
        out_shape=jax.ShapeDtypeStruct((B, 1), jnp.float32),
        grid=(num_blocks,),
        in_specs=[
            pl.BlockSpec((TB, state_dim), lambda i: (i, 0)),   # x: tiled, double-buffered
            const(w1c), const(b1),                             # weights: VMEM-resident
            const(w2c), const(b2),
            const(w3_row), const(b3),
        ],
        out_specs=pl.BlockSpec((TB, 1), lambda i: (i, 0)),
        compiler_params=pltpu.CompilerParams(
            dimension_semantics=("parallel",),
            vmem_limit_bytes=vmem_limit),
        cost_estimate=pl.CostEstimate(flops=flops, transcendentals=0,
                                      bytes_accessed=bytes_accessed),
    )(x, w1c, b1, w2c, b2, w3_row, b3)
    return out


def init_value_params(key, state_dim: int, hidden_dim: int = 64):
    """Deterministic init mimicking nn.Linear's U(-1/sqrt(fan_in), 1/sqrt(fan_in)).

    Weights are returned already transposed to (in_features, out_features).
    """
    ks = jax.random.split(key, 6)

    def lin(kw, kb, fan_in, fan_out):
        bound = 1.0 / jnp.sqrt(fan_in)
        w = jax.random.uniform(kw, (fan_in, fan_out), jnp.float32, -bound, bound)
        b = jax.random.uniform(kb, (1, fan_out), jnp.float32, -bound, bound)
        return w, b

    w1, b1 = lin(ks[0], ks[1], state_dim, hidden_dim)
    w2, b2 = lin(ks[2], ks[3], hidden_dim, hidden_dim)
    w3, b3 = lin(ks[4], ks[5], hidden_dim, 1)
    return (w1, b1, w2, b2, w3, b3)


def value_forward_ref(x, params):
    """Pure-JAX reference for correctness checking."""
    w1, b1, w2, b2, w3, b3 = params
    h = jnp.maximum(x @ w1 + b1, 0.0)
    h = jnp.maximum(h @ w2 + b2, 0.0)
    return h @ w3 + b3


if __name__ == "__main__":
    key = jax.random.PRNGKey(0)
    k_params, k_x, k_x2 = jax.random.split(key, 3)

    state_dim = 8      # LunarLander-v2 observation size
    hidden_dim = 64
    batch = 8

    params = init_value_params(k_params, state_dim, hidden_dim)

    # Small case (single tile, grid=(1,)).
    x = jax.random.normal(k_x, (batch, state_dim), jnp.float32)
    out = jax.block_until_ready(value_forward(x, params))
    ref = value_forward_ref(x, params)
    assert out.shape == (batch, 1), out.shape
    assert jnp.allclose(out, ref, atol=1e-5, rtol=1e-5), "mismatch vs reference (B=8)"

    # Non-divisible batch exercising the unpadded cdiv grid + boundary-block
    # write masking (grid=(3,), last block 44 valid rows of 128).
    batch2 = 300
    x2 = jax.random.normal(k_x2, (batch2, state_dim), jnp.float32)
    out2 = jax.block_until_ready(value_forward(x2, params, block_batch=128))
    ref2 = value_forward_ref(x2, params)
    assert out2.shape == (batch2, 1), out2.shape
    assert jnp.allclose(out2, ref2, atol=1e-5, rtol=1e-5), "mismatch vs reference (B=300)"

    # Non-multiple-of-8 block_batch is rounded to the sublane multiple.
    out3 = jax.block_until_ready(value_forward(x2, params, block_batch=100))
    assert jnp.allclose(out3, ref2, atol=1e-5, rtol=1e-5), "mismatch vs reference (TB round)"

    # bf16 compute path (in-kernel narrowing, f32 accumulation) — loose tolerance.
    out4 = jax.block_until_ready(
        value_forward(x2, params, block_batch=128, compute_dtype=jnp.bfloat16))
    assert jnp.allclose(out4, ref2, atol=1e-1, rtol=1e-1), "mismatch vs reference (bf16)"

    print("KERNEL_OK")
</pallas_src>

<mosaic_0001>
module attributes {stable_mosaic.version = 11 : i64} {
  func.func @value_mlp_kernel(%arg0: i32, %arg1: memref<8x8xf32, #tpu.memory_space<vmem>>, %arg2: memref<8x64xf32, #tpu.memory_space<vmem>>, %arg3: memref<1x64xf32, #tpu.memory_space<vmem>>, %arg4: memref<64x64xf32, #tpu.memory_space<vmem>>, %arg5: memref<1x64xf32, #tpu.memory_space<vmem>>, %arg6: memref<1x64xf32, #tpu.memory_space<vmem>>, %arg7: memref<1x1xf32, #tpu.memory_space<vmem>>, %arg8: memref<8x1xf32, #tpu.memory_space<vmem>>) attributes {dimension_semantics = [#tpu.dimension_semantics<parallel>], iteration_bounds = array<i64: 1>, scalar_prefetch = 0 : i64, scratch_operands = 0 : i64, tpu.core_type = #tpu.core_type<tc>, window_params = [{transform_indices = @transform_0, window_bounds = array<i64: 8, 8>}, {pipeline_mode = #tpu.pipeline_mode<synchronous>, transform_indices = @transform_1, window_bounds = array<i64: 8, 64>}, {pipeline_mode = #tpu.pipeline_mode<synchronous>, transform_indices = @transform_2, window_bounds = array<i64: 1, 64>}, {pipeline_mode = #tpu.pipeline_mode<synchronous>, transform_indices = @transform_3, window_bounds = array<i64: 64, 64>}, {pipeline_mode = #tpu.pipeline_mode<synchronous>, transform_indices = @transform_4, window_bounds = array<i64: 1, 64>}, {pipeline_mode = #tpu.pipeline_mode<synchronous>, transform_indices = @transform_5, window_bounds = array<i64: 1, 64>}, {pipeline_mode = #tpu.pipeline_mode<synchronous>, transform_indices = @transform_6, window_bounds = array<i64: 1, 1>}, {transform_indices = @transform_7, window_bounds = array<i64: 8, 1>}]} {
    %c0 = arith.constant 0 : index
    %c0_0 = arith.constant 0 : index
    %0 = vector.load %arg3[%c0, %c0_0] : memref<1x64xf32, #tpu.memory_space<vmem>>, vector<1x64xf32>
    %c0_1 = arith.constant 0 : index
    %c0_2 = arith.constant 0 : index
    %1 = vector.load %arg5[%c0_1, %c0_2] : memref<1x64xf32, #tpu.memory_space<vmem>>, vector<1x64xf32>
    %c0_3 = arith.constant 0 : index
    %c0_4 = arith.constant 0 : index
    %2 = vector.load %arg7[%c0_3, %c0_4] : memref<1x1xf32, #tpu.memory_space<vmem>>, vector<1x1xf32>
    %c0_5 = arith.constant 0 : index
    %c0_6 = arith.constant 0 : index
    %3 = vector.load %arg6[%c0_5, %c0_6] : memref<1x64xf32, #tpu.memory_space<vmem>>, vector<1x64xf32>
    %c0_7 = arith.constant 0 : index
    %c0_8 = arith.constant 0 : index
    %4 = vector.load %arg1[%c0_7, %c0_8] : memref<8x8xf32, #tpu.memory_space<vmem>>, vector<8x8xf32>
    %c0_9 = arith.constant 0 : index
    %c0_10 = arith.constant 0 : index
    %5 = vector.load %arg2[%c0_9, %c0_10] : memref<8x64xf32, #tpu.memory_space<vmem>>, vector<8x64xf32>
    %cst = arith.constant dense<0.000000e+00> : vector<8x64xf32>
    %6 = tpu.matmul %4, %5, %cst {dimension_numbers = #tpu.dot_dimension_numbers<[1], [0], [0], [1], [0, 0, 1, 1], [], []>} : vector<8x8xf32>, vector<8x64xf32>, vector<8x64xf32> -> vector<8x64xf32>
    %7 = vector.broadcast %0 : vector<1x64xf32> to vector<8x64xf32>
    %8 = arith.addf %6, %7 : vector<8x64xf32>
    %cst_11 = arith.constant 0.000000e+00 : f32
    %9 = vector.broadcast %cst_11 : f32 to vector<8x64xf32>
    %10 = arith.maximumf %8, %9 : vector<8x64xf32>
    %c0_12 = arith.constant 0 : index
    %c0_13 = arith.constant 0 : index
    %11 = vector.load %arg4[%c0_12, %c0_13] : memref<64x64xf32, #tpu.memory_space<vmem>>, vector<64x64xf32>
    %cst_14 = arith.constant dense<0.000000e+00> : vector<8x64xf32>
    %12 = tpu.matmul %10, %11, %cst_14 {dimension_numbers = #tpu.dot_dimension_numbers<[1], [0], [0], [1], [0, 0, 1, 1], [], []>} : vector<8x64xf32>, vector<64x64xf32>, vector<8x64xf32> -> vector<8x64xf32>
    %13 = vector.broadcast %1 : vector<1x64xf32> to vector<8x64xf32>
    %14 = arith.addf %12, %13 : vector<8x64xf32>
    %cst_15 = arith.constant 0.000000e+00 : f32
    %15 = vector.broadcast %cst_15 : f32 to vector<8x64xf32>
    %16 = arith.maximumf %14, %15 : vector<8x64xf32>
    %17 = vector.broadcast %3 : vector<1x64xf32> to vector<8x64xf32>
    %18 = arith.mulf %16, %17 : vector<8x64xf32>
    %cst_16 = arith.constant dense<0.000000e+00> : vector<8xf32>
    %19 = vector.multi_reduction <add>, %18, %cst_16 [1] : vector<8x64xf32> to vector<8xf32>
    %20 = vector.shape_cast %19 : vector<8xf32> to vector<8x1xf32>
    %21 = vector.broadcast %2 : vector<1x1xf32> to vector<8x1xf32>
    %22 = arith.addf %20, %21 : vector<8x1xf32>
    %c0_17 = arith.constant 0 : index
    %c0_18 = arith.constant 0 : index
    %23 = vector.load %arg8[%c0_17, %c0_18] : memref<8x1xf32, #tpu.memory_space<vmem>>, vector<8x1xf32>
    tpu.vector_store %arg8[%c0_17, %c0_18], %22 {strides = array<i32>} : memref<8x1xf32, #tpu.memory_space<vmem>>, vector<8x1xf32>,
    return
  }
  func.func @transform_0(%arg0: i32) -> (i32, i32) {
    %c0_i32 = arith.constant 0 : i32
    %c0_i32_0 = arith.constant 0 : i32
    return %arg0, %c0_i32 : i32, i32
  }
  func.func @transform_1(%arg0: i32) -> (i32, i32) {
    %c0_i32 = arith.constant 0 : i32
    %c0_i32_0 = arith.constant 0 : i32
    %c0_i32_1 = arith.constant 0 : i32
    return %c0_i32, %c0_i32_0 : i32, i32
  }
  func.func @transform_2(%arg0: i32) -> (i32, i32) {
    %c0_i32 = arith.constant 0 : i32
    %c0_i32_0 = arith.constant 0 : i32
    %c0_i32_1 = arith.constant 0 : i32
    return %c0_i32, %c0_i32_0 : i32, i32
  }
  func.func @transform_3(%arg0: i32) -> (i32, i32) {
    %c0_i32 = arith.constant 0 : i32
    %c0_i32_0 = arith.constant 0 : i32
    %c0_i32_1 = arith.constant 0 : i32
    return %c0_i32, %c0_i32_0 : i32, i32
  }
  func.func @transform_4(%arg0: i32) -> (i32, i32) {
    %c0_i32 = arith.constant 0 : i32
    %c0_i32_0 = arith.constant 0 : i32
    %c0_i32_1 = arith.constant 0 : i32
    return %c0_i32, %c0_i32_0 : i32, i32
  }
  func.func @transform_5(%arg0: i32) -> (i32, i32) {
    %c0_i32 = arith.constant 0 : i32
    %c0_i32_0 = arith.constant 0 : i32
    %c0_i32_1 = arith.constant 0 : i32
    return %c0_i32, %c0_i32_0 : i32, i32
  }
  func.func @transform_6(%arg0: i32) -> (i32, i32) {
    %c0_i32 = arith.constant 0 : i32
    %c0_i32_0 = arith.constant 0 : i32
    %c0_i32_1 = arith.constant 0 : i32
    return %c0_i32, %c0_i32_0 : i32, i32
  }
  func.func @transform_7(%arg0: i32) -> (i32, i32) {
    %c0_i32 = arith.constant 0 : i32
    %c0_i32_0 = arith.constant 0 : i32
    return %arg0, %c0_i32 : i32, i32
  }
}

</mosaic_0001>

<bundles_post_ra>
// kernel: tpu_custom_call.1
= control target key start
LH: loop header
LB: loop body
LE: loop exit
PB: predicated region body
PF: predicated region fallthrough
CT: control target
= control target key end

     0   :  { %s496_s0 = inlined_call_operand.hbm [shape: f32[8,8], index: 0, kind: input, shape index: {}]   ;;  %s497_s1 = inlined_call_operand.hbm [shape: f32[8,64], index: 1, kind: input, shape index: {}]   ;;  %s498_s2 = inlined_call_operand.vmem [shape: f32[1,64], index: 2, kind: input, shape index: {}]   ;;  %s499_s3 = inlined_call_operand.hbm [shape: f32[64,64], index: 3, kind: input, shape index: {}]   ;;  %s500_s4 = inlined_call_operand.vmem [shape: f32[1,64], index: 4, kind: input, shape index: {}]   ;;  %s501_s5 = inlined_call_operand.vmem [shape: f32[1,64], index: 5, kind: input, shape index: {}]   ;;  %s502_s6 = inlined_call_operand.<no memory space> [shape: f32[1,1], index: 6, kind: input, shape index: {}]   ;;  %s503_s7 = inlined_call_operand.vmem [shape: f32[8,1], index: 7, kind: output, shape index: {}]  }
   0x1   :  { %v12_v0 = vstv %s502_s6 }
   0x2   :  { %13 = vst [vmem:[#allocation2] sm:$0x1] %v12_v0 }
   0x3   :  { %14 = vsyncpa [#allocation4], 0 }
   0x4   :  { %15 = vsyncpa [#allocation6], 0  ;;  %s397_s26 = smov [#allocation5]   ;;  %s398_s28 = smov [#allocation3]  }
   0x5   :  { %s32_s27 = sshll.u32 %s397_s26, 4  ;;  %s22_s29 = sshll.u32 %s398_s28, 4  ;;  %s33_s27 = int_to_ptr.vmem [resolvable:$true] %s32_s27  ;;  %s23_s29 = int_to_ptr.vmem [resolvable:$true] %s22_s29 }
   0x6   :  { %s327_s9 = scalar_lea.hbm %s497_s1, 128 }
   0x7   :  { %p328_p0 = scmp.ne.s32.totalorder %s497_s1, %s327_s9  ;;  %p331_p1 = scmp.lt.u32.totalorder %s327_s9, %s497_s1 }
   0x9   :  { %p333_p2 = pnand %p331_p1, %p328_p0 }
   0xb   :  { %336 = shalt.err (!%p333_p2)
}
   0xc   :  { %s337_s6 = scalar_lea.vmem %s33_s27, 128  ;;  %p342_p4 = scmp.lt.s32.totalorder %s33_s27, %s33_s27 }
   0xd   :  { %p338_p3 = scmp.ne.s32.totalorder %s33_s27, %s337_s6  ;;  %p343_p5 = scmp.lt.s32.totalorder %s337_s6, %s337_s6 }
   0xf   :  { %p344_p6 = por %p343_p5, %p342_p4 }
  0x11   :  { %p345_p7 = pnand %p344_p6, %p338_p3 }
  0x13   :  { %348 = shalt.err (!%p345_p7)
}
  0x14   :  { %35 = dma.hbm_to_vmem [thread:$0]  %s497_s1, 128, %s33_s27, [#allocation6]  }
  0x15   :  { %s349_s18 = scalar_lea.hbm %s496_s0, 128 }
  0x16   :  { %p350_p8 = scmp.ne.s32.totalorder %s496_s0, %s349_s18  ;;  %p353_p9 = scmp.lt.u32.totalorder %s349_s18, %s496_s0 }
  0x18   :  { %p355_p10 = pnand %p353_p9, %p350_p8 }
  0x1a   :  { %358 = shalt.err (!%p355_p10)
}
  0x1b   :  { %s359_s23 = scalar_lea.vmem %s23_s29, 128  ;;  %p364_p12 = scmp.lt.s32.totalorder %s23_s29, %s23_s29 }
  0x1c   :  { %p360_p11 = scmp.ne.s32.totalorder %s23_s29, %s359_s23  ;;  %p365_p13 = scmp.lt.s32.totalorder %s359_s23, %s359_s23 }
  0x1e   :  { %p366_p0 = por %p365_p13, %p364_p12 }
  0x20   :  { %p367_p1 = pnand %p366_p0, %p360_p11 }
  0x22   :  { %370 = shalt.err (!%p367_p1)
}
  0x23   :  { %25 = dma.hbm_to_vmem [thread:$0]  %s496_s0, 128, %s23_s29, [#allocation4]  }
  0x24   :  { %s399_s25 = smov [#allocation7]   ;;  %s371_s30 = scalar_lea.hbm %s499_s3, 1024 }
  0x25   :  { %s43_s26 = sshll.u32 %s399_s25, 4  ;;  %p372_p2 = scmp.ne.s32.totalorder %s499_s3, %s371_s30  ;;  %s44_s26 = int_to_ptr.vmem [resolvable:$true] %s43_s26 }
  0x26   :  { %p375_p3 = scmp.lt.u32.totalorder %s371_s30, %s499_s3 }
  0x28   :  { %p377_p4 = pnand %p375_p3, %p372_p2 }
  0x2a   :  { %380 = shalt.err (!%p377_p4)
}
  0x2b   :  { %s381_s12 = scalar_lea.vmem %s44_s26, 1024  ;;  %p386_p6 = scmp.lt.s32.totalorder %s44_s26, %s44_s26 }
  0x2c   :  { %p382_p5 = scmp.ne.s32.totalorder %s44_s26, %s381_s12  ;;  %p387_p7 = scmp.lt.s32.totalorder %s381_s12, %s381_s12 }
  0x2e   :  { %p388_p8 = por %p387_p7, %p386_p6 }
  0x30   :  { %p389_p9 = pnand %p388_p8, %p382_p5 }
  0x32   :  { %392 = shalt.err (!%p389_p9)
}
  0x33   :  { %s400_s0 = smov 128   ;;  %s401_s29 = smov 8  }
  0x34   :  { %49 = dma.hbm_to_vmem [thread:$0]  %s499_s3, 1024, %s44_s26, [#allocation6], %s400_s0, %s400_s0, %s401_s29  }
  0x35   :  { %393 = dma.done.wait [#allocation4], 128  }
  0x36   :  { %394 = vsyncadd [#allocation4], 4294967168 }
  0x37   :  { %395 = dma.done.wait [#allocation6], 1152  }
  0x38   :  { %396 = vsyncadd [#allocation6], 4294966144  ;;  %v402_v1 = vmov 0.0   ;;  %vm403_vm0 = vmmov 0   ;;  %v404_v2 = vmov 0.0|0.0   ;;  %vm77_vm1 = vcmask 64512  }
  0x39   :  { %283 = vmatprep.subr.mxu0 %v402_v1  ;;  %285 = vmatprep.mubr.msk.f32.mxu0 %vm403_vm0, %v402_v1  ;;  %v70_v3 = vld [vmem:[#allocation5] sm:$0xff]  ;;  %v69_v4 = vld [vmem:[#allocation3] sm:$0xff]  ;;  %v152_v5 = vld [vmem:[#allocation7] sm:$0xff]  ;;  %vm166_vm2 = vcmask 523264   ;;  %vm258_vm3 = vcmask 7168  }
  0x3a   :  { %307 = vmatprep.subr.bf16.mxu1 %v404_v2  ;;  %304 = vmatprep.mubr.msk.f32.mxu1 %vm403_vm0, %v402_v1  ;;  %v153_v6 = vld [vmem:[#allocation7 + $0x8] sm:$0xff]  ;;  %v154_v7 = vld [vmem:[#allocation7 + $0x10] sm:$0xff]  ;;  %v155_v8 = vld [vmem:[#allocation7 + $0x18] sm:$0xff] }
  0x3b   :  { %284 = vmatpush3.msra.mxu0 %v70_v3  ;;  %v308_v9 = vpack.c.bf16 %v153_v6, %v152_v5  ;;  %v311_v10 = vpack.c.bf16 %v155_v8, %v154_v7  ;;  %v156_v11 = vld [vmem:[#allocation7 + $0x20] sm:$0xff]  ;;  %v157_v12 = vld [vmem:[#allocation7 + $0x28] sm:$0xff]  ;;  %v158_v14 = vld [vmem:[#allocation7 + $0x30] sm:$0xff] }
  0x3c   :  { %286 = vmatmul.mubr.msk.f32.vlgmr.msra.gmra.mrb[0].mxu0 %vm77_vm1, %v69_v4  ;;  %v314_v13 = vpack.c.bf16 %v157_v12, %v156_v11  ;;  %v159_v15 = vld [vmem:[#allocation7 + $0x38] sm:$0xff]  ;;  %v266_v17 = vld [vmem:[%s498_s2] ss:$0 sm:$0xff] }
  0x3d   :  { %309 = vmatpush3.bf16.msra.mxu1 %v308_v9  ;;  %v317_v16 = vpack.c.bf16 %v159_v15, %v158_v14  ;;  %v268_v22 = vld [vmem:[%s500_s4] ss:$0 sm:$0xff] }
  0x3e   :  { %310 = vmatprep.subr.bf16.mxu1 %v404_v2  ;;  %v270_v26 = vld [vmem:[%s501_s5] ss:$0 sm:$0xff] }
  0x3f   :  { %v271_v30 = vld [vmem:[#allocation2] ss:$0 sm:$0xff] }
  0x41   :  { %312 = vmatpush3.bf16.msra.mxu1 %v311_v10 }
  0x42   :  { %313 = vmatprep.subr.bf16.mxu1 %v404_v2 }
  0x45   :  { %315 = vmatpush3.bf16.msra.mxu1 %v314_v13 }
  0x46   :  { %316 = vmatprep.subr.bf16.mxu1 %v404_v2 }
  0x49   :  { %318 = vmatpush3.bf16.msra.mxu1 %v317_v16 }
 0x10f   :  { %v147_v18 = vpop.f32.mrb[0].mxu0 }
 0x110   :  { %v148_v19 = vadd.f32 %v266_v17, %v147_v18  ;;  %v287_v20 = vpop.f32.mrb[1].mxu0 }
 0x112   :  { %v151_v21 = vmax.f32 %v148_v19, 0.0 }
 0x114   :  { %305 = vmatmul.mubr.msk.f32.vlgmr.msra.gmra.mrb[0].mxu1 %vm166_vm2, %v151_v21 }
 0x1e7   :  { %v236_v23 = vpop.f32.mrb[0].mxu1 }
 0x1e8   :  { %v237_v24 = vadd.f32 %v268_v22, %v236_v23  ;;  %v306_v25 = vpop.f32.mrb[1].mxu1 }
 0x1ea   :  { %v240_v27 = vmax.f32 %v237_v24, 0.0 }
 0x1ec   :  { %v247_v28 = vmul.f32 %v270_v26, %v240_v27 }
 0x1ee   :  { %v248_v29 = vsel %vm166_vm2, %v247_v28, 0.0 }
 0x1ef   :  { %249 = vadd.xlane.f32.xlu0 %v248_v29 }
 0x27c   :  { %v250_v31 = vpop.xlane.xlu0 %249 }
 0x27d   :  { %v257_v32 = vadd.f32 %v271_v30, %v250_v31 }
 0x27f   :  { %259 = vst.msk [vmem:[%s503_s7] sm:$0xff] %vm258_vm3, %v257_v32 }
 0x280   :  { %264 = vsyncpa [#allocation4], 1 }
 0x281   :  { %265 = vsyncpa [#allocation6], 1 }

</bundles_post_ra>
